<compile_context>
chip_gen: v6e
topology: v6e:2x2x1
jax: 0.10.0
libtpu: 0.0.40
codegen_flags: <defaults>
</compile_context>

<pallas_src>
import numpy as np
import jax
import jax.numpy as jnp
from jax.experimental import pallas as pl
from jax.experimental.pallas import tpu as pltpu


def _copy_kernel(x_ref, o_ref):
    # Elementwise pass-through on the current VMEM tile (the closest
    # tensor-level equivalent of a forward pass that computes nothing).
    o_ref[...] = x_ref[...]


# Per-tile VMEM budget (bytes). Conservative so double-buffered (in + out)
# tiles stay well inside the default scoped VMEM on all of v5e/v6e/v7x
# (v7x physical VMEM is only 64 MiB, 32 MiB default scoped).
_TILE_BYTES_BUDGET = 4 * 1024 * 1024


def identity_pallas(x2d: jax.Array) -> jax.Array:
    """Lane-dense identity copy over a 2D array.

    Requires rows % 8 == 0 and cols % 128 == 0 so every block satisfies the
    (8, 128) tiling constraint and every store is a full, unmasked `vst`.
    """
    rows, cols = x2d.shape
    if cols % 128 != 0 or rows % 8 != 0:
        raise ValueError("identity_pallas expects rows % 8 == 0 and cols % 128 == 0")

    itemsize = jnp.dtype(x2d.dtype).itemsize
    total_bytes = rows * cols * itemsize

    if total_bytes <= _TILE_BYTES_BUDGET:
        # Small input: one block -> single grid step, whole array in VMEM,
        # zero pipeline/grid-step overhead.
        tile_rows = rows
    else:
        # Large input: biggest row-tile (multiple of 8) that fits the budget,
        # avoiding the "whole array as one block" VMEM cliff at scale.
        rows_fit = max(8, (_TILE_BYTES_BUDGET // (cols * itemsize)) // 8 * 8)
        tile_rows = min(rows, rows_fit)

    grid = (pl.cdiv(rows, tile_rows),)

    return pl.pallas_call(
        _copy_kernel,
        out_shape=jax.ShapeDtypeStruct((rows, cols), x2d.dtype),
        grid=grid,
        in_specs=[pl.BlockSpec((tile_rows, cols), lambda i: (i, 0))],
        out_specs=pl.BlockSpec((tile_rows, cols), lambda i: (i, 0)),
        # Pure identity: alias the input HBM buffer to the output so the
        # memory-bound copy does not pay for a separate output stream.
        input_output_aliases={0: 0},
        compiler_params=pltpu.CompilerParams(
            # "parallel" lets v7x shard the row axis across its 2 TensorCores;
            # neutral on single-TC v5e/v6e.
            dimension_semantics=("parallel",),
        ),
    )(x2d)


# jit + donation so the input/output alias is actually realized (no extra copy).
_identity_pallas_jit = jax.jit(identity_pallas, donate_argnums=(0,))


class ViTPallas:
    """Pallas mirror of the PyTorch `ViT` stub (print-only module)."""

    def __init__(self, args=None):
        # Matches reference __init__: banner print, no parameters declared.
        print('####this is Vit!####')

    def forward(self):
        # Matches the reference exactly: side-effect print, returns None.
        # TODO(synk): the reference ViT.forward is an empty stub (no tensors,
        # no compute); there is no patch-embed / attention / MLP to translate.
        print('forward')
        return None


if __name__ == "__main__":
    key = jax.random.PRNGKey(0)
    # Deterministic NCHW input consistent with a vision-model entry point.
    x = jax.random.normal(key, (2, 4, 16, 16), dtype=jnp.float32)  # N, C, H, W

    model = ViTPallas(args=None)
    _ = model.forward()  # reproduces the stub forward (prints 'forward', returns None)

    # Host copy for verification (the device input buffer is donated to the kernel).
    x_host = np.asarray(jax.device_get(x))

    # Lane-dense flatten: 2*4*16*16 = 2048 elements -> (16, 128), so the last
    # dim maps fully onto the 128-lane axis (unmasked stores, no vreg padding).
    x2d = x.reshape(16, 128)
    y2d = jax.block_until_ready(_identity_pallas_jit(x2d))

    y_host = np.asarray(jax.device_get(y2d)).reshape(x_host.shape)
    assert y_host.shape == x_host.shape
    assert np.array_equal(y_host, x_host)
    print("KERNEL_OK")
</pallas_src>

<mosaic_0001>
module attributes {stable_mosaic.version = 11 : i64} {
  func.func @_copy_kernel(%arg0: i32, %arg1: memref<16x128xf32, #tpu.memory_space<vmem>>, %arg2: memref<16x128xf32, #tpu.memory_space<vmem>>) attributes {dimension_semantics = [#tpu.dimension_semantics<parallel>], iteration_bounds = array<i64: 1>, scalar_prefetch = 0 : i64, scratch_operands = 0 : i64, tpu.core_type = #tpu.core_type<tc>, window_params = [{transform_indices = @transform_0, window_bounds = array<i64: 16, 128>}, {transform_indices = @transform_1, window_bounds = array<i64: 16, 128>}]} {
    %c0 = arith.constant 0 : index
    %c0_0 = arith.constant 0 : index
    %0 = vector.load %arg1[%c0, %c0_0] : memref<16x128xf32, #tpu.memory_space<vmem>>, vector<16x128xf32>
    %c0_1 = arith.constant 0 : index
    %c0_2 = arith.constant 0 : index
    %1 = vector.load %arg2[%c0_1, %c0_2] : memref<16x128xf32, #tpu.memory_space<vmem>>, vector<16x128xf32>
    tpu.vector_store %arg2[%c0_1, %c0_2], %0 {strides = array<i32>} : memref<16x128xf32, #tpu.memory_space<vmem>>, vector<16x128xf32>,
    return
  }
  func.func @transform_0(%arg0: i32) -> (i32, i32) {
    %c0_i32 = arith.constant 0 : i32
    %c0_i32_0 = arith.constant 0 : i32
    return %arg0, %c0_i32 : i32, i32
  }
  func.func @transform_1(%arg0: i32) -> (i32, i32) {
    %c0_i32 = arith.constant 0 : i32
    %c0_i32_0 = arith.constant 0 : i32
    return %arg0, %c0_i32 : i32, i32
  }
}

</mosaic_0001>

<bundles_post_ra>
// kernel: identity_pallas.1
= control target key start
LH: loop header
LB: loop body
LE: loop exit
PB: predicated region body
PF: predicated region fallthrough
CT: control target
= control target key end

     0   :  { %6 = vsyncpa [#allocation3], 0  ;;  %s112_s0 = inlined_call_operand.hbm [shape: f32[16,128], index: 0, kind: input, shape index: {}, may-alias: {0,1}]   ;;  %s113_s1 = inlined_call_operand.hbm [shape: f32[16,128], index: 1, kind: output, shape index: {}, may-alias: {0,1}]  }
   0x1   :  { %7 = vsyncpa [#allocation4], 0  ;;  %s92_s6 = smov [#allocation2]  }
   0x2   :  { %s13_s7 = sshll.u32 %s92_s6, 4  ;;  %s14_s7 = int_to_ptr.vmem [resolvable:$true] %s13_s7 }
   0x3   :  { %s56_s8 = scalar_lea.vmem %s14_s7, 256  ;;  %p61_p1 = scmp.lt.s32.totalorder %s14_s7, %s14_s7 }
   0x4   :  { %p57_p0 = scmp.ne.s32.totalorder %s14_s7, %s56_s8  ;;  %p62_p2 = scmp.lt.s32.totalorder %s56_s8, %s56_s8 }
   0x6   :  { %p63_p3 = por %p62_p2, %p61_p1 }
   0x8   :  { %p64_p4 = pnand %p63_p3, %p57_p0 }
   0xa   :  { %67 = shalt.err (!%p64_p4)
}
   0xb   :  { %s93_s9 = smov 128   ;;  %s94_s10 = smov 8  }
   0xc   :  { %19 = dma.hbm_to_vmem [thread:$0]  %s112_s0, 256, %s14_s7, [#allocation3], %s93_s9, %s93_s9, %s94_s10  }
   0xd   :  { %88 = dma.done.wait [#allocation3], 256  }
   0xe   :  { %89 = vsyncadd [#allocation3], 4294967040  ;;  %s95_s13 = smov [#allocation5]   ;;  %v23_v0 = vld [vmem:[#allocation2] sm:$0xff]  ;;  %v24_v1 = vld [vmem:[#allocation2 + $0x8] sm:$0xff] }
   0xf   :  { %s32_s14 = sshll.u32 %s95_s13, 4  ;;  %25 = vst [vmem:[#allocation5] sm:$0xff] %v23_v0  ;;  %26 = vst [vmem:[#allocation5 + $0x8] sm:$0xff] %v24_v1  ;;  %s33_s14 = int_to_ptr.vmem [resolvable:$true] %s32_s14 }
  0x10   :  { %s68_s15 = scalar_lea.vmem %s33_s14, 256  ;;  %p73_p6 = scmp.lt.s32.totalorder %s33_s14, %s33_s14 }
  0x11   :  { %p69_p5 = scmp.ne.s32.totalorder %s33_s14, %s68_s15  ;;  %p74_p7 = scmp.lt.s32.totalorder %s68_s15, %s68_s15 }
  0x13   :  { %p75_p8 = por %p74_p7, %p73_p6 }
  0x15   :  { %p76_p9 = pnand %p75_p8, %p69_p5 }
  0x17   :  { %79 = shalt.err (!%p76_p9)
}
  0x18   :  { %38 = dma.vmem_to_hbm [thread:$0]  %s33_s14, 256, %s113_s1, [#allocation4], %s93_s9, %s93_s9, %s94_s10  }
  0x19   :  { %90 = dma.done.wait [#allocation4], 256  }
  0x1a   :  { %91 = vsyncadd [#allocation4], 4294967040 }
  0x1b   :  { %42 = vsyncpa [#allocation3], 1 }
  0x1c   :  { %43 = vsyncpa [#allocation4], 1 }

</bundles_post_ra>
